<compile_context>
chip_gen: v6e
topology: v6e:2x2x1
jax: 0.10.0
libtpu: 0.0.40
codegen_flags: <defaults>
</compile_context>

<pallas_src>
import jax
import jax.numpy as jnp
from jax.experimental import pallas as pl
from jax.experimental.pallas import tpu as pltpu


def _make_kernel(block_n, HW, K_pad, F_pad, cls_pad):
    M = block_n * HW
    inv_hw = 1.0 / HW

    def kernel(x_ref, pool_ref, wconv_ref, bconv_ref, wfc_ref, bfc_ref,
               out_ref):
        # x_ref: (1, M, K_pad) bf16 -- pre-im2col'd, lane-dense (K on lanes).
        patches = x_ref[0]                                       # (M, K_pad) bf16

        # Conv as one batched MXU matmul, f32 accumulation; bias+ReLU in f32.
        conv = jnp.dot(patches, wconv_ref[...],
                       preferred_element_type=jnp.float32)       # (M, F_pad)
        act = jnp.maximum(conv + bconv_ref[...], 0.0)

        # Global average pool on the MXU: grid-invariant 0/1 selection matrix
        # (hoisted to the wrapper), bf16 operands, exact 1/HW scale in f32.
        pooled = jnp.dot(pool_ref[...], act.astype(jnp.bfloat16),
                         preferred_element_type=jnp.float32) * inv_hw

        # Classifier head (lane-dense: class dim padded to 128).
        logits = jnp.dot(pooled.astype(jnp.bfloat16), wfc_ref[...],
                         preferred_element_type=jnp.float32) + bfc_ref[...]
        out_ref[0] = logits                                      # (bn, cls_pad)

    return kernel


def image_model_forward(x_nchw, conv_w, conv_b, fc_w, fc_b):
    """x_nchw: (N, C, H, W) f32.  conv_w: (F, C, 3, 3), conv_b: (F,),
       fc_w: (class_n, F), fc_b: (class_n,)."""
    N, C, H, W = x_nchw.shape
    F = conv_w.shape[0]
    class_n = fc_w.shape[0]
    HW = H * W

    # Lane-dense padded sizes.
    K_raw = 9 * C
    K_pad = ((K_raw + 127) // 128) * 128
    F_pad = ((F + 127) // 128) * 128
    cls_pad = ((class_n + 127) // 128) * 128

    # block_n <= 16 keeps per-step VMEM a few MB (safe under v5e's 16 MiB
    # scoped default); (N+1)//2 keeps >=2 grid steps whenever N>=2 so both
    # v7x TensorCores get work, while steps stay large on v5e/v6e.
    block_n = min(16, max(1, (N + 1) // 2))
    num_groups = -(-N // block_n)
    N_pad = num_groups * block_n
    M = block_n * HW

    # ---- wrapper-side im2col (lane-dense), bf16 -----------------------------
    xp = jnp.transpose(x_nchw, (0, 2, 3, 1))                     # (N,H,W,C)
    xp = jnp.pad(xp, ((0, 0), (1, 1), (1, 1), (0, 0)))           # SAME padding
    taps = [xp[:, dh:dh + H, dw:dw + W, :]
            for dh in range(3) for dw in range(3)]
    patches = jnp.concatenate(taps, axis=-1)                     # (N,H,W,9C)
    patches = patches.reshape(N, HW, K_raw)
    # NOTE: padded batch rows (N_pad > N) produce bias-only logits; they are
    # sliced off below -- never reduce over them.
    patches = jnp.pad(patches, ((0, N_pad - N), (0, 0), (0, K_pad - K_raw)))
    patches = patches.astype(jnp.bfloat16).reshape(num_groups, M, K_pad)

    # Conv weight (F,C,3,3) -> rows ordered (kh, kw, c) -> (K_pad, F_pad) bf16.
    wconv = jnp.transpose(conv_w, (2, 3, 1, 0)).reshape(K_raw, F)
    wconv = jnp.pad(wconv, ((0, K_pad - K_raw), (0, F_pad - F)))
    wconv = wconv.astype(jnp.bfloat16)
    bconv = jnp.pad(conv_b, (0, F_pad - F)).reshape(1, F_pad).astype(jnp.float32)

    wfc = jnp.pad(fc_w.T, ((0, F_pad - F), (0, cls_pad - class_n)))
    wfc = wfc.astype(jnp.bfloat16)                               # (F_pad, cls_pad)
    bfc = jnp.pad(fc_b, (0, cls_pad - class_n)).reshape(1, cls_pad)
    bfc = bfc.astype(jnp.float32)

    # Grid-invariant pooling selection matrix (0/1), hoisted out of the kernel.
    sel = (jnp.arange(M)[None, :] // HW
           == jnp.arange(block_n)[:, None]).astype(jnp.bfloat16)  # (bn, M)

    kernel = _make_kernel(block_n, HW, K_pad, F_pad, cls_pad)

    flops = num_groups * (2 * M * K_pad * F_pad            # conv matmul
                          + 2 * block_n * M * F_pad        # pooling matmul
                          + 2 * block_n * F_pad * cls_pad)  # fc matmul
    bytes_accessed = (patches.size * 2 + sel.size * 2 + wconv.size * 2
                      + wfc.size * 2 + bconv.size * 4 + bfc.size * 4
                      + num_groups * block_n * cls_pad * 4)

    out = pl.pallas_call(
        kernel,
        out_shape=jax.ShapeDtypeStruct((num_groups, block_n, cls_pad),
                                       jnp.float32),
        grid_spec=pltpu.PrefetchScalarGridSpec(
            num_scalar_prefetch=0,
            grid=(num_groups,),
            in_specs=[
                pl.BlockSpec((1, M, K_pad), lambda g: (g, 0, 0)),
                pl.BlockSpec((block_n, M), lambda g: (0, 0)),      # pool sel
                pl.BlockSpec((K_pad, F_pad), lambda g: (0, 0)),    # conv W
                pl.BlockSpec((1, F_pad), lambda g: (0, 0)),        # conv b
                pl.BlockSpec((F_pad, cls_pad), lambda g: (0, 0)),  # fc W
                pl.BlockSpec((1, cls_pad), lambda g: (0, 0)),      # fc b
            ],
            out_specs=pl.BlockSpec((1, block_n, cls_pad), lambda g: (g, 0, 0)),
        ),
        compiler_params=pltpu.CompilerParams(
            dimension_semantics=("parallel",),
            vmem_limit_bytes=32 << 20),
        cost_estimate=pl.CostEstimate(
            flops=flops, transcendentals=0, bytes_accessed=bytes_accessed),
    )(patches, sel, wconv, bconv, wfc, bfc)

    return out.reshape(N_pad, cls_pad)[:N, :class_n]


def _reference_forward(x_nchw, conv_w, conv_b, fc_w, fc_b):
    """Pure-JAX f32 reference matching the PyTorch semantics."""
    y = jax.lax.conv_general_dilated(
        x_nchw, conv_w, window_strides=(1, 1), padding="SAME",
        dimension_numbers=("NCHW", "OIHW", "NCHW"))
    y = y + conv_b[None, :, None, None]
    y = jnp.maximum(y, 0.0)
    feat = jnp.mean(y, axis=(2, 3))                               # (N, F)
    return feat @ fc_w.T + fc_b


if __name__ == "__main__":
    key = jax.random.PRNGKey(0)
    N, C, H, W = 2, 3, 16, 16        # small image batch (RGB)
    F = 32                           # encoder.num_features
    class_n = 10                     # replaced fc out_features

    k1, k2, k3, k4, k5 = jax.random.split(key, 5)
    x = jax.random.normal(k1, (N, C, H, W), jnp.float32)
    conv_w = jax.random.normal(k2, (F, C, 3, 3), jnp.float32) * 0.1
    conv_b = jax.random.normal(k3, (F,), jnp.float32) * 0.1
    fc_w = jax.random.normal(k4, (class_n, F), jnp.float32) * 0.1
    fc_b = jax.random.normal(k5, (class_n,), jnp.float32) * 0.1

    out = image_model_forward(x, conv_w, conv_b, fc_w, fc_b)
    out = jax.block_until_ready(out)

    ref = _reference_forward(x, conv_w, conv_b, fc_w, fc_b)
    assert out.shape == (N, class_n)
    # bf16 activations/weights with f32 accumulation -> loose tolerance.
    assert jnp.allclose(out, ref, atol=2e-2, rtol=2e-2), (out, ref)

    # TODO(synk): the real timm backbone (many conv blocks / attention) is not
    # reproducible without weights; this kernel implements the structural
    # encoder -> GAP -> Linear(class_n) path only.
    print("KERNEL_OK")
</pallas_src>

<mosaic_0001>
module attributes {stable_mosaic.version = 11 : i64} {
  func.func @kernel(%arg0: i32, %arg1: memref<1x256x128xbf16, #tpu.memory_space<vmem>>, %arg2: memref<1x256xbf16, #tpu.memory_space<vmem>>, %arg3: memref<128x128xbf16, #tpu.memory_space<vmem>>, %arg4: memref<1x128xf32, #tpu.memory_space<vmem>>, %arg5: memref<128x128xbf16, #tpu.memory_space<vmem>>, %arg6: memref<1x128xf32, #tpu.memory_space<vmem>>, %arg7: memref<1x1x128xf32, #tpu.memory_space<vmem>>) attributes {dimension_semantics = [#tpu.dimension_semantics<parallel>], iteration_bounds = array<i64: 2>, scalar_prefetch = 0 : i64, scratch_operands = 0 : i64, tpu.core_type = #tpu.core_type<tc>, window_params = [{transform_indices = @transform_0, window_bounds = array<i64: 1, 256, 128>}, {pipeline_mode = #tpu.pipeline_mode<synchronous>, transform_indices = @transform_1, window_bounds = array<i64: 1, 256>}, {pipeline_mode = #tpu.pipeline_mode<synchronous>, transform_indices = @transform_2, window_bounds = array<i64: 128, 128>}, {pipeline_mode = #tpu.pipeline_mode<synchronous>, transform_indices = @transform_3, window_bounds = array<i64: 1, 128>}, {pipeline_mode = #tpu.pipeline_mode<synchronous>, transform_indices = @transform_4, window_bounds = array<i64: 128, 128>}, {pipeline_mode = #tpu.pipeline_mode<synchronous>, transform_indices = @transform_5, window_bounds = array<i64: 1, 128>}, {transform_indices = @transform_6, window_bounds = array<i64: 1, 1, 128>}]} {
    %c0 = arith.constant 0 : index
    %c0_0 = arith.constant 0 : index
    %c0_1 = arith.constant 0 : index
    %0 = vector.load %arg1[%c0, %c0_0, %c0_1] : memref<1x256x128xbf16, #tpu.memory_space<vmem>>, vector<1x256x128xbf16>
    %1 = vector.shape_cast %0 : vector<1x256x128xbf16> to vector<256x128xbf16>
    %c0_2 = arith.constant 0 : index
    %c0_3 = arith.constant 0 : index
    %2 = vector.load %arg3[%c0_2, %c0_3] : memref<128x128xbf16, #tpu.memory_space<vmem>>, vector<128x128xbf16>
    %cst = arith.constant dense<0.000000e+00> : vector<256x128xf32>
    %3 = tpu.matmul %1, %2, %cst {dimension_numbers = #tpu.dot_dimension_numbers<[1], [0], [0], [1], [0, 0, 1, 1], [], []>} : vector<256x128xbf16>, vector<128x128xbf16>, vector<256x128xf32> -> vector<256x128xf32>
    %c0_4 = arith.constant 0 : index
    %c0_5 = arith.constant 0 : index
    %4 = vector.load %arg4[%c0_4, %c0_5] : memref<1x128xf32, #tpu.memory_space<vmem>>, vector<1x128xf32>
    %5 = vector.broadcast %4 : vector<1x128xf32> to vector<256x128xf32>
    %6 = arith.addf %3, %5 : vector<256x128xf32>
    %cst_6 = arith.constant 0.000000e+00 : f32
    %7 = vector.broadcast %cst_6 : f32 to vector<256x128xf32>
    %8 = arith.maximumf %6, %7 : vector<256x128xf32>
    %c0_7 = arith.constant 0 : index
    %c0_8 = arith.constant 0 : index
    %9 = vector.load %arg2[%c0_7, %c0_8] : memref<1x256xbf16, #tpu.memory_space<vmem>>, vector<1x256xbf16>
    %10 = arith.truncf %8 : vector<256x128xf32> to vector<256x128xbf16>
    %cst_9 = arith.constant dense<0.000000e+00> : vector<1x128xf32>
    %11 = tpu.matmul %9, %10, %cst_9 {dimension_numbers = #tpu.dot_dimension_numbers<[1], [0], [0], [1], [0, 0, 1, 1], [], []>} : vector<1x256xbf16>, vector<256x128xbf16>, vector<1x128xf32> -> vector<1x128xf32>
    %cst_10 = arith.constant 3.906250e-03 : f32
    %12 = vector.broadcast %cst_10 : f32 to vector<1x128xf32>
    %13 = arith.mulf %11, %12 : vector<1x128xf32>
    %14 = arith.truncf %13 : vector<1x128xf32> to vector<1x128xbf16>
    %c0_11 = arith.constant 0 : index
    %c0_12 = arith.constant 0 : index
    %15 = vector.load %arg5[%c0_11, %c0_12] : memref<128x128xbf16, #tpu.memory_space<vmem>>, vector<128x128xbf16>
    %cst_13 = arith.constant dense<0.000000e+00> : vector<1x128xf32>
    %16 = tpu.matmul %14, %15, %cst_13 {dimension_numbers = #tpu.dot_dimension_numbers<[1], [0], [0], [1], [0, 0, 1, 1], [], []>} : vector<1x128xbf16>, vector<128x128xbf16>, vector<1x128xf32> -> vector<1x128xf32>
    %c0_14 = arith.constant 0 : index
    %c0_15 = arith.constant 0 : index
    %17 = vector.load %arg6[%c0_14, %c0_15] : memref<1x128xf32, #tpu.memory_space<vmem>>, vector<1x128xf32>
    %18 = arith.addf %16, %17 : vector<1x128xf32>
    %c0_16 = arith.constant 0 : index
    %c0_17 = arith.constant 0 : index
    %c0_18 = arith.constant 0 : index
    %19 = vector.load %arg7[%c0_16, %c0_17, %c0_18] : memref<1x1x128xf32, #tpu.memory_space<vmem>>, vector<1x1x128xf32>
    %20 = vector.shape_cast %19 : vector<1x1x128xf32> to vector<1x128xf32>
    %21 = vector.shape_cast %18 : vector<1x128xf32> to vector<1x1x128xf32>
    tpu.vector_store %arg7[%c0_16, %c0_17, %c0_18], %21 {strides = array<i32>} : memref<1x1x128xf32, #tpu.memory_space<vmem>>, vector<1x1x128xf32>,
    return
  }
  func.func @transform_0(%arg0: i32) -> (i32, i32, i32) {
    %c0_i32 = arith.constant 0 : i32
    %c0_i32_0 = arith.constant 0 : i32
    %c0_i32_1 = arith.constant 0 : i32
    return %arg0, %c0_i32, %c0_i32_0 : i32, i32, i32
  }
  func.func @transform_1(%arg0: i32) -> (i32, i32) {
    %c0_i32 = arith.constant 0 : i32
    %c0_i32_0 = arith.constant 0 : i32
    %c0_i32_1 = arith.constant 0 : i32
    return %c0_i32, %c0_i32_0 : i32, i32
  }
  func.func @transform_2(%arg0: i32) -> (i32, i32) {
    %c0_i32 = arith.constant 0 : i32
    %c0_i32_0 = arith.constant 0 : i32
    %c0_i32_1 = arith.constant 0 : i32
    return %c0_i32, %c0_i32_0 : i32, i32
  }
  func.func @transform_3(%arg0: i32) -> (i32, i32) {
    %c0_i32 = arith.constant 0 : i32
    %c0_i32_0 = arith.constant 0 : i32
    %c0_i32_1 = arith.constant 0 : i32
    return %c0_i32, %c0_i32_0 : i32, i32
  }
  func.func @transform_4(%arg0: i32) -> (i32, i32) {
    %c0_i32 = arith.constant 0 : i32
    %c0_i32_0 = arith.constant 0 : i32
    %c0_i32_1 = arith.constant 0 : i32
    return %c0_i32, %c0_i32_0 : i32, i32
  }
  func.func @transform_5(%arg0: i32) -> (i32, i32) {
    %c0_i32 = arith.constant 0 : i32
    %c0_i32_0 = arith.constant 0 : i32
    %c0_i32_1 = arith.constant 0 : i32
    return %c0_i32, %c0_i32_0 : i32, i32
  }
  func.func @transform_6(%arg0: i32) -> (i32, i32, i32) {
    %c0_i32 = arith.constant 0 : i32
    %c0_i32_0 = arith.constant 0 : i32
    %c0_i32_1 = arith.constant 0 : i32
    return %arg0, %c0_i32, %c0_i32_0 : i32, i32, i32
  }
}

</mosaic_0001>

<bundles_post_ra>
// kernel: tpu_custom_call.1
= control target key start
LH: loop header
LB: loop body
LE: loop exit
PB: predicated region body
PF: predicated region fallthrough
CT: control target
= control target key end

     0   :  { %11 = vsyncpa [#allocation3], 0  ;;  %s1818_s0 = inlined_call_operand.hbm [shape: bf16[2,256,128], index: 0, kind: input, shape index: {}]   ;;  %s1819_s1 = inlined_call_operand.hbm [shape: bf16[1,256], index: 1, kind: input, shape index: {}]   ;;  %s1820_s2 = inlined_call_operand.hbm [shape: bf16[128,128], index: 2, kind: input, shape index: {}]   ;;  %s1821_s3 = inlined_call_operand.vmem [shape: f32[1,128], index: 3, kind: input, shape index: {}]   ;;  %s1822_s4 = inlined_call_operand.hbm [shape: bf16[128,128], index: 4, kind: input, shape index: {}]   ;;  %s1823_s5 = inlined_call_operand.vmem [shape: f32[1,128], index: 5, kind: input, shape index: {}]   ;;  %s1824_s6 = inlined_call_operand.hbm [shape: f32[2,1,128], index: 6, kind: output, shape index: {}]  }
   0x1   :  { %13 = vsyncpa [#allocation3 + $0x1], 0 }
   0x2   :  { %14 = vsyncpa [#allocation6], 0 }
   0x3   :  { %15 = vsyncpa [#allocation9], 0 }
   0x4   :  { %16 = vsyncpa [#allocation4], 0 }
   0x5   :  { %18 = vsyncpa [#allocation4 + $0x1], 0  ;;  %s1516_s21 = smov 0   ;;  %s1518_s22 = smov 0  }
   0x6   :  { %s1520_s23 = smov 0   ;;  %s1522_s24 = smov 0  }
   0x7 LB: > { %s1537_s25 = sadd.s32 4294967295, %s1469_s24   ;;  %s1002_s26 = sadd.s32 4294967294, %s1469_s24   ;;  %s1469_s24 = sphi %s1522_s24, %s1852_s24   ;;  %s1465_s23 = sphi %s1520_s23, %s1851_s23   ;;  %s1461_s22 = sphi %s1518_s22, %s1850_s22   ;;  %s1457_s21 = sphi %s1516_s21, %s1849_s21  }
   0x8   : > { %p44_p0 = scmp.ne.s32.totalorder %s1461_s22, %s1457_s21  ;;  %p1825_p1 = scmp.eq.s32.totalorder %s1537_s25, 0 }
   0x9   : > { %p179_p3 = scmp.eq.s32.totalorder %s1002_s26, 1  ;;  %p1003_p5 = scmp.ge.s32.totalorder %s1469_s24, 1 }
   0xa   : > { %p1546_p4 = por %p1825_p1, %p44_p0  ;;  %p186_p7 = scmp.lt.s32.totalorder %s1469_s24, 3 }
   0xb   : > { %p1551_p6 = por %p179_p3, %p44_p0  ;;  %s1471_s30 = smov [#allocation5]  }
   0xc   : > { %s1831_s27 = scalar_select %p1546_p4, 1, 0 }
   0xd   : > { %s1832_s28 = scalar_select %p1551_p6, 1, 0 }
   0xe   : > { %p1556_p8 = pnand %p1003_p5, %p186_p7  ;;  %s199_s7 = sshll.u32 %s1471_s30, 4  ;;  %s200_s7 = int_to_ptr.vmem [resolvable:$true] %s199_s7 }
   0xf   : > { %s1472_s8 = smov [#allocation7]   ;;  %s1473_s11 = smov [#allocation8]  }
  0x10   : > { %s1833_s29 = scalar_select %p1556_p8, 1, 0 }
  0x11   : > { %p1193_p10 = pneg %p1556_p8  ;;  %s209_s9 = sshll.u32 %s1472_s8, 4  ;;  %s210_s9 = int_to_ptr.vmem [resolvable:$true] %s209_s9 }
  0x12   : > { %s225_s12 = sshll.u32 %s1473_s11, 4  ;;  %s1302_s13 = scalar_lea.vmem %s200_s7, 32  ;;  %s226_s12 = int_to_ptr.vmem [resolvable:$true] %s225_s12 }
  0x13   : > { %p1565_p11 = pnand %p1193_p10, %p1825_p1  ;;  %p1303_p13 = scmp.ne.s32.totalorder %s200_s7, %s1302_s13 }
  0x14   : > { %p1310_p5 = scmp.lt.s32.totalorder %s200_s7, %s200_s7  ;;  %p1311_p7 = scmp.lt.s32.totalorder %s1302_s13, %s1302_s13 }
  0x15   : > { %p1293_p12 = pneg %p1565_p11 }
  0x16   : > { %p1312_p9 = por %p1311_p7, %p1310_p5 }
  0x17   : > { %p1305_p0 = pnand %p1303_p13, %p1293_p12 }
  0x19   : > { %p1306_p3 = pneg %p1305_p0 }
  0x1b   : > { %p1313_p10 = pnand %p1312_p9, %p1306_p3 }
  0x1d   : > { %1316 = shalt.err (!%p1313_p10)
}
  0x1e   : > { %1196 = dma.hbm_to_vmem [thread:$0]  (!%p1565_p11), %s1819_s1, 32, %s200_s7, [#allocation6]  }
  0x1f   : > { %s1328_s16 = scalar_lea.vmem %s210_s9, 1024  ;;  %p1336_p13 = scmp.lt.s32.totalorder %s210_s9, %s210_s9 }
  0x20   : > { %p1329_p1 = scmp.ne.s32.totalorder %s210_s9, %s1328_s16  ;;  %p1337_p0 = scmp.lt.s32.totalorder %s1328_s16, %s1328_s16 }
  0x22   : > { %p1331_p2 = pnand %p1329_p1, %p1293_p12  ;;  %p1338_p4 = por %p1337_p0, %p1336_p13 }
  0x24   : > { %p1332_p6 = pneg %p1331_p2 }
  0x26   : > { %p1339_p8 = pnand %p1338_p4, %p1332_p6 }
  0x28   : > { %1342 = shalt.err (!%p1339_p8)
}
  0x29   : > { %s1828_s17 = smov 64   ;;  %s1829_s18 = smov 4  }
  0x2a   : > { %1199 = dma.hbm_to_vmem [thread:$0]  (!%p1565_p11), %s1820_s2, 1024, %s210_s9, [#allocation6], %s1828_s17, %s1828_s17, %s1829_s18  }
  0x2b   : > { %s1354_s26 = scalar_lea.vmem %s226_s12, 1024  ;;  %p1362_p6 = scmp.lt.s32.totalorder %s226_s12, %s226_s12 }
  0x2c   : > { %p1355_p1 = scmp.ne.s32.totalorder %s226_s12, %s1354_s26  ;;  %p1363_p8 = scmp.lt.s32.totalorder %s1354_s26, %s1354_s26 }
  0x2e   : > { %p1357_p2 = pnand %p1355_p1, %p1293_p12  ;;  %p1364_p9 = por %p1363_p8, %p1362_p6 }
  0x30   : > { %p1358_p4 = pneg %p1357_p2 }
  0x32   : > { %p1365_p3 = pnand %p1364_p9, %p1358_p4 }
  0x34   : > { %1368 = shalt.err (!%p1365_p3)
}
  0x35   : > { %1202 = dma.hbm_to_vmem [thread:$0]  (!%p1565_p11), %s1822_s4, 1024, %s226_s12, [#allocation9], %s1828_s17, %s1828_s17, %s1829_s18  }
  0x36   : > { %s1602_s8 = sadd.s32 1, %s1469_s24   ;;  %s31_s10 = sadd.s32 1, %s1465_s23 }
  0x37   : > { %s28_s9 = ssub.s32 %s1469_s24, %s1602_s8  ;;  %p38_p5 = scmp.ne.s32.totalorder %s1465_s23, %s1461_s22 }
  0x38   : > { %p29_p12 = scmp.eq.s32.totalorder %s28_s9, 0  ;;  %p39_p7 = scmp.eq.s32.totalorder %s1469_s24, 0 }
  0x39   : > { %p1214_p10 = scmp.lt.s32.totalorder %s1469_s24, 2  ;;  %p1835_p0 = scmp.eq.s32.totalorder %s1537_s25, 1 }
  0x3a   : > { %s1612_s11 = scalar_select %p29_p12, %s1465_s23, %s31_s10  }
  0x3b   : > { %p40_p13 = por %p39_p7, %p38_p5  ;;  %p1616_p1 = por %p1835_p0, %p38_p5 }
  0x3c   : > { %s242_s14 = sand.u32 1, %s1465_s23   ;;  %s1053_s15 = sshll.u32 %s1469_s24, 11 }
  0x3d   : > { %s1836_s13 = scalar_select %p1616_p1, 1, 0 }
  0x3e   : > { %s1008_s12 = sshll.u32 %s242_s14, 7  ;;  %s1625_s20 = scalar_lea.hbm %s1818_s0, %s1053_s15 }
  0x3f   : > { %s246_s26 = scalar_lea.vmem [#allocation2], %s1008_s12  ;;  %p1627_p11 = pnand %p1214_p10, %p40_p13 }
  0x40   : > { %s253_s30 = sshll.u32 %s246_s26, 4  ;;  %s1633_s9 = scalar_lea.sflag [#allocation3], %s242_s14  ;;  %s1631_s30 = int_to_ptr.vmem [resolvable:$true] %s253_s30 }
  0x41   : > { %s1369_s10 = scalar_lea.hbm %s1625_s20, 2048  ;;  %p1371_p4 = pneg %p1627_p11 }
  0x42   : > { %p1370_p2 = scmp.ne.s32.totalorder %s1625_s20, %s1369_s10  ;;  %s1374_s12 = scalar_lea.hbm %s1818_s0, 4096 }
  0x43   : > { %p1375_p9 = scmp.lt.s32.totalorder %s1625_s20, %s1818_s0  ;;  %p1376_p3 = scmp.lt.s32.totalorder %s1374_s12, %s1369_s10 }
  0x44   : > { %p1372_p6 = pnand %p1371_p4, %p1370_p2 }
  0x45   : > { %p1377_p12 = por %p1376_p3, %p1375_p9 }
  0x46   : > { %p1373_p8 = pneg %p1372_p6 }
  0x48   : > { %p1378_p5 = pnand %p1377_p12, %p1373_p8 }
  0x4a   : > { %1381 = shalt.err (!%p1378_p5)
}
  0x4b   : > { %s1382_s14 = scalar_lea.vmem %s1631_s30, 2048  ;;  %s1476_s17 = smov [#allocation2]  }
  0x4c   : > { %p1383_p7 = scmp.ne.s32.totalorder %s1631_s30, %s1382_s14  ;;  %s1387_s18 = sshll.u32 %s1476_s17, 4  ;;  %s1388_s18 = int_to_ptr.vmem [resolvable:$false] %s1387_s18 }
  0x4d   : > { %s1389_s15 = scalar_lea.vmem %s1388_s18, 4096  ;;  %p1390_p0 = scmp.lt.s32.totalorder %s1631_s30, %s1388_s18 }
  0x4e   : > { %p1385_p10 = pnand %p1383_p7, %p1371_p4  ;;  %p1391_p2 = scmp.lt.s32.totalorder %s1389_s15, %s1382_s14 }
  0x50   : > { %p1386_p13 = pneg %p1385_p10  ;;  %p1392_p6 = por %p1391_p2, %p1390_p0 }
  0x52   : > { %p1393_p1 = pnand %p1392_p6, %p1386_p13 }
  0x54   : > { %1396 = shalt.err (!%p1393_p1)
}
  0x55   : > { %s1838_s10 = smov 4   ;;  %s1839_s16 = smov 64  }
  0x56   : > { %1206 = dma.hbm_to_vmem [thread:$0]  (!%p1627_p11), %s1625_s20, 2048, %s1631_s30, %s1633_s9, %s1839_s16, %s1839_s16, %s1838_s10  }
  0x57   : > { %p1840_p4 = scmp.ne.s32.totalorder %s1833_s29, 0 }
  0x58   : > { %s1660_s17 = sand.u32 (!%p1840_p4), 1, %s1461_s22   ;;  %p1841_p1 = scmp.ne.s32.totalorder (!%p1840_p4), %s1831_s27, 0 }
  0x59   : > { %265 = sbr.rel (%p1840_p4) target bundleno = 836 (0x344), region = 44  ;;  %s1012_s18 = sshll.u32 (!%p1840_p4), %s1660_s17, 7 }
  0x5a   : > { %s268_s12 = scalar_lea.sflag (!%p1840_p4), [#allocation3], %s1660_s17  ;;  %s1664_s19 = scalar_lea.vmem (!%p1840_p4), [#allocation2], %s1012_s18 }
  0x5e   : > { %1440 = dma.done.wait (%p1841_p1), %s268_s12, 2048  }
  0x5f   : > { %1442 = vsyncadd (%p1841_p1), %s268_s12, 4294965248  ;;  %p1842_p11 = scmp.eq.s32.totalorder %s1537_s25, 0 }
  0x61   : > { %1444 = dma.done.wait (%p1842_p11), [#allocation6], 1056   ;;  %p1843_p8 = pmov %p1842_p11 }
  0x63   : > { %1446 = vsyncadd (%p1843_p8), [#allocation6], 4294966240  ;;  %p1844_p9 = pmov %p1843_p8 }
  0x64   : > { %p1845_p3 = pmov %p1843_p8 }
  0x65   : > { %1448 = dma.done.wait (%p1844_p9), [#allocation9], 1024  }
  0x66   : > { %1450 = vsyncadd (%p1845_p3), [#allocation9], 4294966272  ;;  %v1259_v0 = vld [vmem:[#allocation7 + $0x38] sm:$0xff]   ;;  %v1260_v1 = vld [vmem:[#allocation7 + $0x30] sm:$0xff]   ;;  %v1477_v24 = vmov 1966171168   ;;  %v733_v26 = vlaneseq }
  0x67   : > { %1109 = vmatprep.subr.bf16.mxu0 %v1259_v0  ;;  %v1261_v2 = vld [vmem:[#allocation7 + $0x28] sm:$0xff]   ;;  %v1262_v3 = vld [vmem:[#allocation7 + $0x20] sm:$0xff]   ;;  %v1263_v5 = vld [vmem:[#allocation7 + $0x18] sm:$0xff]   ;;  %v731_v25 = vunpack.c.l.s4 %v1477_v24  ;;  %vm1479_vm0 = vmmov 0   ;;  %s1050_s7 = sshll.u32 %s1537_s25, 4  ;;  %s310_s9 = scalar_lea.vmem [#allocation10], %s1660_s17 }
  0x68   : > { %1110 = vmatpush3.bf16.msra.mxu0 %v1259_v0  ;;  %v1267_v4 = vld [vmem:[%s1664_s19] sm:$0xff]   ;;  %v1264_v6 = vld [vmem:[#allocation7 + $0x10] sm:$0xff]   ;;  %v1265_v7 = vld [vmem:[#allocation7 + $0x8] sm:$0xff]   ;;  %v734_v28 = vshrl.u32 %v733_v26, 7  ;;  %s907_s26 = sshll.u32 %s310_s9, 4  ;;  %s1775_s10 = scalar_lea.hbm %s1824_s6, %s1050_s7  ;;  %s1777_s26 = int_to_ptr.vmem [resolvable:$true] %s907_s26 }
  0x69   : > { %1111 = vmatprep.subr.bf16.mxu0 %v1260_v1  ;;  %1125 = vmatprep.mubr.bf16.mxu0 %v1267_v4  ;;  %v1266_v8 = vld [vmem:[#allocation7] sm:$0xff]   ;;  %v1269_v10 = vld [vmem:[%s1664_s19 + $0x10] sm:$0xff]   ;;  %v1270_v11 = vld [vmem:[%s1664_s19 + $0x18] sm:$0xff]   ;;  %v732_v27 = vunpack.c.0.s8 %v731_v25  ;;  %s895_s16 = scalar_lea.sflag [#allocation4], %s1660_s17  ;;  %s1397_s18 = scalar_lea.vmem %s1777_s26, 16 }
  0x6a   : > { %v1268_v9 = vld [vmem:[%s1664_s19 + $0x8] sm:$0xff]   ;;  %v1271_v12 = vld [vmem:[%s1664_s19 + $0x20] sm:$0xff]   ;;  %v1273_v14 = vld [vmem:[%s1664_s19 + $0x30] sm:$0xff]   ;;  %p1398_p12 = scmp.ne.s32.totalorder %s1777_s26, %s1397_s18  ;;  %p1846_p5 = scmp.ne.s32.totalorder %s1836_s13, 0 }
  0x6b   : > { %v1272_v13 = vld [vmem:[%s1664_s19 + $0x28] sm:$0xff]   ;;  %v1274_v15 = vld [vmem:[%s1664_s19 + $0x38] sm:$0xff]   ;;  %v1275_v16 = vld [vmem:[%s1664_s19 + $0x40] sm:$0xff]   ;;  %v1698_v31 = vsub.s32 %v732_v27, %v734_v28  ;;  %s1480_s25 = smov [#allocation10]  }
  0x6c   : > { %1112 = vmatpush3.bf16.msra.mxu0 %v1260_v1  ;;  %v1276_v17 = vld [vmem:[%s1664_s19 + $0x48] sm:$0xff]   ;;  %v1277_v18 = vld [vmem:[%s1664_s19 + $0x50] sm:$0xff]   ;;  %v1278_v19 = vld [vmem:[%s1664_s19 + $0x58] sm:$0xff]   ;;  %p1399_p7 = pnand %p1398_p12, %p1846_p5  ;;  %s1401_s12 = sshll.u32 %s1480_s25, 4  ;;  %s1402_s12 = int_to_ptr.vmem [resolvable:$false] %s1401_s12 }
  0x6d   : > { %1113 = vmatprep.subr.bf16.mxu0 %v1261_v2  ;;  %v1279_v20 = vld [vmem:[%s1664_s19 + $0x60] sm:$0xff]   ;;  %v1280_v21 = vld [vmem:[%s1664_s19 + $0x68] sm:$0xff]   ;;  %v1281_v22 = vld [vmem:[%s1664_s19 + $0x70] sm:$0xff]   ;;  %p1404_p13 = scmp.lt.s32.totalorder %s1777_s26, %s1402_s12 }
  0x6e   : > { %v1282_v23 = vld [vmem:[%s1664_s19 + $0x78] sm:$0xff]   ;;  %v1694_v29 = vld.sshfl [vmem:[#allocation5] sm:$0x11 pattern:$0x75316420]  ;;  %p1400_p10 = pneg %p1399_p7  ;;  %s1403_s19 = scalar_lea.vmem %s1402_s12, 32 }
  0x6f   : > { %v729_v30 = vcombine.high %v1694_v29, %v1694_v29  ;;  %v736_v33 = vrot.slane %v1694_v29, %v1698_v31  ;;  %v1706_v35 = vld [vmem:[%s1821_s3] ss:$0 sm:$0xff]  ;;  %v1290_v29 = vld [vmem:[#allocation8] sm:$0xff]   ;;  %p1405_p0 = scmp.lt.s32.totalorder %s1403_s19, %s1397_s18 }
  0x70   : > { %1114 = vmatpush3.bf16.msra.mxu0 %v1261_v2 }
  0x71   : > { %1115 = vmatprep.subr.bf16.mxu0 %v1262_v3  ;;  %v743_v32 = vrot.slane %v729_v30, %v1698_v31  ;;  %p1406_p2 = por %p1405_p0, %p1404_p13 }
  0x73   : > { %778 = vmatprep.mubr.bf16.mxu1 %v743_v32  ;;  %p1407_p6 = pnand %p1406_p2, %p1400_p10 }
  0x74   : > { %1116 = vmatpush3.bf16.msra.mxu0 %v1262_v3 }
  0x75   : > { %1117 = vmatprep.subr.bf16.mxu0 %v1263_v5 }
  0x78   : > { %1118 = vmatpush3.bf16.msra.mxu0 %v1263_v5 }
  0x79   : > { %1119 = vmatprep.subr.bf16.mxu0 %v1264_v6 }
  0x7c   : > { %1120 = vmatpush3.bf16.msra.mxu0 %v1264_v6 }
  0x7d   : > { %1121 = vmatprep.subr.bf16.mxu0 %v1265_v7 }
  0x80   : > { %1122 = vmatpush3.bf16.msra.mxu0 %v1265_v7 }
  0x81   : > { %1123 = vmatprep.subr.bf16.mxu0 %v1266_v8 }
  0x84   : > { %1124 = vmatpush3.bf16.msra.mxu0 %v1266_v8 }
  0x87   : > { %1126 = vmatmul.mubr.bf16.vlgmr.msra.gmra.mxu0 %v1268_v9 }
  0x88   : > { %1129 = vmatprep.mubr.bf16.mxu0 %v1269_v10 }
  0x8f   : > { %1130 = vmatmul.mubr.bf16.gmra.mxu0 %v1270_v11 }
  0x90   : > { %1133 = vmatprep.mubr.bf16.mxu0 %v1271_v12 }
  0x97   : > { %1134 = vmatmul.mubr.bf16.gmra.mxu0 %v1272_v13 }
  0x98   : > { %1137 = vmatprep.mubr.bf16.mxu0 %v1273_v14 }
  0x9f   : > { %1138 = vmatmul.mubr.bf16.gmra.mxu0 %v1274_v15 }
  0xa0   : > { %1141 = vmatprep.mubr.bf16.mxu0 %v1275_v16 }
  0xa7   : > { %1142 = vmatmul.mubr.bf16.gmra.mxu0 %v1276_v17 }
  0xa8   : > { %1145 = vmatprep.mubr.bf16.mxu0 %v1277_v18 }
  0xaf   : > { %1146 = vmatmul.mubr.bf16.gmra.mxu0 %v1278_v19 }
  0xb0   : > { %1149 = vmatprep.mubr.bf16.mxu0 %v1279_v20 }
  0xb7   : > { %1150 = vmatmul.mubr.bf16.gmra.mxu0 %v1280_v21 }
  0xb8   : > { %1153 = vmatprep.mubr.bf16.mxu0 %v1281_v22 }
  0xbf   : > { %1154 = vmatmul.mubr.bf16.gmra.mxu0 %v1282_v23 }
 0x147   : > { %v1127_v34 = vpop.f32.mrf.mxu0 }
 0x148   : > { %v554_v37 = vadd.f32 %v1127_v34, %v1706_v35 }
 0x149   : > { %v545_v36 = vpop.f32.mrf.mxu0 }
 0x14a   : > { %v546_v39 = vadd.f32 %v1706_v35, %v545_v36  ;;  %v674_v42 = vmax.f32 %v554_v37, 0.0 }
 0x14b   : > { %v1128_v38 = vpop.f32.mrf.mxu0 }
 0x14c   : > { %v557_v40 = vadd.f32 %v1128_v38, %v1706_v35  ;;  %v672_v46 = vmax.f32 %v546_v39, 0.0 }
 0x14d   : > { %v548_v41 = vpop.f32.mrf.mxu0 }
 0x14e   : > { %v675_v43 = vmax.f32 %v557_v40, 0.0  ;;  %v549_v44 = vadd.f32 %v1706_v35, %v548_v41 }
 0x14f   : > { %v1131_v45 = vpop.f32.mrf.mxu0 }
 0x150   : > { %v1712_v47 = vpack.c.bf16 %v675_v43, %v674_v42  ;;  %v673_v48 = vmax.f32 %v549_v44, 0.0  ;;  %v570_v51 = vadd.f32 %v1131_v45, %v1706_v35 }
 0x151   : > { %v561_v49 = vpop.f32.mrf.mxu0 }
 0x152   : > { %v1714_v50 = vpack.c.bf16 %v673_v48, %v672_v46  ;;  %v562_v53 = vadd.f32 %v1706_v35, %v561_v49  ;;  %v678_v56 = vmax.f32 %v570_v51, 0.0 }
 0x153   : > { %v1132_v52 = vpop.f32.mrf.mxu0 }
 0x154   : > { %v573_v54 = vadd.f32 %v1132_v52, %v1706_v35  ;;  %v676_v60 = vmax.f32 %v562_v53, 0.0 }
 0x155   : > { %v564_v55 = vpop.f32.mrf.mxu0 }
 0x156   : > { %v679_v57 = vmax.f32 %v573_v54, 0.0  ;;  %v565_v58 = vadd.f32 %v1706_v35, %v564_v55 }
 0x157   : > { %v1135_v59 = vpop.f32.mrf.mxu0 }
 0x158   : > { %v1720_v61 = vpack.c.bf16 %v679_v57, %v678_v56  ;;  %v677_v62 = vmax.f32 %v565_v58, 0.0  ;;  %v586_v52 = vadd.f32 %v1135_v59, %v1706_v35 }
 0x159   : > { %v577_v63 = vpop.f32.mrf.mxu0 }
 0x15a   : > { %v1722_v0 = vpack.c.bf16 %v677_v62, %v676_v60 }
 0x15b   : > { %v1136_v1 = vpop.f32.mrf.mxu0 }
 0x15c   : > { %v589_v44 = vadd.f32 %v1136_v1, %v1706_v35 }
 0x15d   : > { %v580_v2 = vpop.f32.mrf.mxu0 }
 0x15e   : > { %v683_v56 = vmax.f32 %v589_v44, 0.0  ;;  %v581_v57 = vadd.f32 %v1706_v35, %v580_v2 }
 0x15f   : > { %v1139_v3 = vpop.f32.mrf.mxu0 }
 0x160   : > { %v602_v23 = vadd.f32 %v1139_v3, %v1706_v35  ;;  %v682_v3 = vmax.f32 %v586_v52, 0.0 }
 0x161   : > { %v593_v4 = vpop.f32.mrf.mxu0 }
 0x162   : > { %v686_v38 = vmax.f32 %v602_v23, 0.0  ;;  %v594_v39 = vadd.f32 %v1706_v35, %v593_v4  ;;  %v578_v4 = vadd.f32 %v1706_v35, %v577_v63 }
 0x163   : > { %v1140_v5 = vpop.f32.mrf.mxu0 }
 0x164   : > { %v605_v20 = vadd.f32 %v1140_v5, %v1706_v35  ;;  %v684_v53 = vmax.f32 %v594_v39, 0.0  ;;  %v680_v2 = vmax.f32 %v578_v4, 0.0  ;;  %v804_v39 = vld [vmem:[%s1823_s5] sm:$0x1] }
 0x165   : > { %v596_v6 = vpop.f32.mrf.mxu0 }
 0x166   : > { %v687_v27 = vmax.f32 %v605_v20, 0.0  ;;  %v597_v28 = vadd.f32 %v1706_v35, %v596_v6  ;;  %v710_v6 = vpack.c.bf16 %v683_v56, %v682_v3 }
 0x167   : > { %v1724_v7 = vpop.f32.mrf.mxu0 }
 0x168   : > { %v685_v45 = vmax.f32 %v597_v28, 0.0  ;;  %v712_v46 = vpack.c.bf16 %v687_v27, %v686_v38 }
 0x169   : > { %v1726_v8 = vpop.f32.mrf.mxu0 }
 0x16a   : > { %v711_v58 = vpack.c.bf16 %v685_v45, %v684_v53 }
 0x16b   : > { %v1728_v9 = vpop.f32.mrf.mxu0 }
 0x16c   : > { %v621_v63 = vadd.f32 %v1728_v9, %v1706_v35 }
 0x16d   : > { %v1730_v10 = vpop.f32.mrf.mxu0 }
 0x16f   : > { %v1147_v11 = vpop.f32.mrf.mxu0 }
 0x170   : > { %v634_v59 = vadd.f32 %v1147_v11, %v1706_v35 }
 0x171   : > { %v625_v12 = vpop.f32.mrf.mxu0 }
 0x173   : > { %v1148_v13 = vpop.f32.mrf.mxu0 }
 0x174   : > { %v637_v60 = vadd.f32 %v1148_v13, %v1706_v35  ;;  %v626_v13 = vadd.f32 %v1706_v35, %v625_v12 }
 0x175   : > { %v628_v14 = vpop.f32.mrf.mxu0 }
 0x176   : > { %v692_v23 = vmax.f32 %v626_v13, 0.0 }
 0x177   : > { %v1151_v15 = vpop.f32.mrf.mxu0 }
 0x178   : > { %v650_v40 = vadd.f32 %v1151_v15, %v1706_v35  ;;  %v681_v15 = vmax.f32 %v581_v57, 0.0 }
 0x179   : > { %v641_v16 = vpop.f32.mrf.mxu0 }
 0x17a   : > { %v698_v54 = vmax.f32 %v650_v40, 0.0  ;;  %v642_v55 = vadd.f32 %v1706_v35, %v641_v16  ;;  %v695_v16 = vmax.f32 %v637_v60, 0.0  ;;  %v709_v20 = vpack.c.bf16 %v681_v15, %v680_v2 }
 0x17b   : > { %v1152_v17 = vpop.f32.mrf.mxu0 }
 0x17c   : > { %v653_v32 = vadd.f32 %v1152_v17, %v1706_v35  ;;  %v696_v5 = vmax.f32 %v642_v55, 0.0  ;;  %v629_v17 = vadd.f32 %v1706_v35, %v628_v14  ;;  %v691_v14 = vmax.f32 %v621_v63, 0.0 }
 0x17d   : > { %v644_v18 = vpop.f32.mrf.mxu0 }
 0x17e   : > { %v699_v48 = vmax.f32 %v653_v32, 0.0  ;;  %v645_v49 = vadd.f32 %v1706_v35, %v644_v18  ;;  %v693_v11 = vmax.f32 %v629_v17, 0.0 }
 0x17f   : > { %v1155_v19 = vpop.f32.mrf.mxu0 }
 0x180   : > { %v666_v22 = vadd.f32 %v1155_v19, %v1706_v35  ;;  %v718_v62 = vpack.c.bf16 %v699_v48, %v698_v54  ;;  %v697_v1 = vmax.f32 %v645_v49, 0.0  ;;  %v694_v19 = vmax.f32 %v634_v59, 0.0 }
 0x181   : > { %v657_v21 = vpop.f32.mrf.mxu0 }
 0x182   : > { %v658_v25 = vadd.f32 %v1706_v35, %v657_v21  ;;  %v702_v34 = vmax.f32 %v666_v22, 0.0  ;;  %v717_v18 = vpack.c.bf16 %v697_v1, %v696_v5  ;;  %v716_v21 = vpack.c.bf16 %v695_v16, %v694_v19 }
 0x183   : > { %v1156_v24 = vpop.f32.mrf.mxu0  ;;  %v618_v22 = vadd.f32 %v1724_v7, %v1706_v35 }
 0x184   : > { %v669_v26 = vadd.f32 %v1156_v24, %v1706_v35  ;;  %v700_v41 = vmax.f32 %v658_v25, 0.0  ;;  %v613_v24 = vadd.f32 %v1706_v35, %v1730_v10  ;;  %v715_v25 = vpack.c.bf16 %v693_v11, %v692_v23  ;;  %v1283_v10 = vld [vmem:[#allocation8 + $0x38] sm:$0xff]  }
 0x185   : > { %v660_v30 = vpop.f32.mrf.mxu0  ;;  %v690_v12 = vmax.f32 %v618_v22, 0.0 }
 0x186   : > { %v703_v36 = vmax.f32 %v669_v26, 0.0  ;;  %v661_v37 = vadd.f32 %v1706_v35, %v660_v30  ;;  %v610_v26 = vadd.f32 %v1706_v35, %v1726_v8  ;;  %v689_v27 = vmax.f32 %v613_v24, 0.0  ;;  %v1284_v35 = vld [vmem:[#allocation8 + $0x30] sm:$0xff]   ;;  %v1289_v8 = vld [vmem:[#allocation8 + $0x8] sm:$0xff]  }
 0x187   : > { %v714_v9 = vpack.c.bf16 %v691_v14, %v690_v12  ;;  %v1478_v30 = vmov 0.0  }
 0x188   : > { %v701_v42 = vmax.f32 %v661_v37, 0.0  ;;  %v720_v43 = vpack.c.bf16 %v703_v36, %v702_v34  ;;  %v688_v28 = vmax.f32 %v610_v26, 0.0 }
 0x18a   : > { %v719_v51 = vpack.c.bf16 %v701_v42, %v700_v41  ;;  %1078 = vmatprep.subr.bf16.mxu1 %v720_v43  ;;  %v713_v7 = vpack.c.bf16 %v689_v27, %v688_v28 }
 0x18b   : > { %1079 = vmatpush3.bf16.msra.mxu1 %v712_v46 }
 0x18c   : > { %1080 = vmatprep.subr.bf16.mxu1 %v719_v51 }
 0x18f   : > { %1081 = vmatpush3.bf16.msra.mxu1 %v711_v58 }
 0x190   : > { %1082 = vmatprep.subr.bf16.mxu1 %v718_v62 }
 0x193   : > { %1083 = vmatpush3.bf16.msra.mxu1 %v710_v6 }
 0x194   : > { %1084 = vmatprep.subr.bf16.mxu1 %v717_v18 }
 0x197   : > { %1085 = vmatpush3.bf16.msra.mxu1 %v709_v20 }
 0x198   : > { %1086 = vmatprep.subr.bf16.mxu1 %v716_v21 }
 0x19b   : > { %1087 = vmatpush3.bf16.msra.mxu1 %v1720_v61  ;;  %v1285_v61 = vld [vmem:[#allocation8 + $0x28] sm:$0xff]  }
 0x19c   : > { %1088 = vmatprep.subr.bf16.mxu1 %v715_v25 }
 0x19f   : > { %1089 = vmatpush3.bf16.msra.mxu1 %v1722_v0  ;;  %v1286_v0 = vld [vmem:[#allocation8 + $0x20] sm:$0xff]  }
 0x1a0   : > { %1090 = vmatprep.subr.bf16.mxu1 %v714_v9 }
 0x1a3   : > { %1091 = vmatpush3.bf16.msra.mxu1 %v1712_v47  ;;  %v1287_v47 = vld [vmem:[#allocation8 + $0x18] sm:$0xff]  }
 0x1a4   : > { %1092 = vmatprep.subr.bf16.mxu1 %v713_v7 }
 0x1a7   : > { %1093 = vmatpush3.bf16.msra.mxu1 %v1714_v50  ;;  %v1288_v50 = vld [vmem:[#allocation8 + $0x10] sm:$0xff]  }
 0x1a8   : > { %1157 = vmatprep.subr.bf16.mxu1 %v1478_v30 }
 0x1aa   : > { %779 = vmatmul.mubr.bf16.vlgmr.msra.gmra.mxu1 %v736_v33 }
 0x1ab   : > { %1158 = vmatpush3.bf16.msra.mxu1 %v1283_v10  ;;  %1173 = vmatprep.mubr.msk.bf16.mxu1 %vm1479_vm0, %v1478_v30 }
 0x1ac   : > { %1159 = vmatprep.subr.bf16.mxu1 %v1478_v30 }
 0x1af   : > { %1160 = vmatpush3.bf16.msra.mxu1 %v1284_v35 }
 0x1b0   : > { %1161 = vmatprep.subr.bf16.mxu1 %v1478_v30 }
 0x1b3   : > { %1162 = vmatpush3.bf16.msra.mxu1 %v1285_v61 }
 0x1b4   : > { %1163 = vmatprep.subr.bf16.mxu1 %v1478_v30 }
 0x1b7   : > { %1164 = vmatpush3.bf16.msra.mxu1 %v1286_v0 }
 0x1b8   : > { %1165 = vmatprep.subr.bf16.mxu1 %v1478_v30 }
 0x1bb   : > { %1166 = vmatpush3.bf16.msra.mxu1 %v1287_v47 }
 0x1bc   : > { %1167 = vmatprep.subr.bf16.mxu1 %v1478_v30 }
 0x1bf   : > { %1168 = vmatpush3.bf16.msra.mxu1 %v1288_v50 }
 0x1c0   : > { %1169 = vmatprep.subr.bf16.mxu1 %v1478_v30 }
 0x1c3   : > { %1170 = vmatpush3.bf16.msra.mxu1 %v1289_v8 }
 0x1c4   : > { %1171 = vmatprep.subr.bf16.mxu1 %v1478_v30 }
 0x1c7   : > { %1172 = vmatpush3.bf16.msra.mxu1 %v1290_v29 }
 0x26a   : > { %v1094_v31 = vpop.f32.mrf.mxu1 }
 0x26c   : > { %v1095_v33 = vpop.f32.mrf.mxu1 }
 0x26d   : > { %v1096_v32 = vadd.f32 %v1095_v33, %v1094_v31 }
 0x26e   : > { %v1097_v34 = vpop.f32.mrf.mxu1 }
 0x26f   : > { %v786_v36 = vmul.f32 0.00390625, %v1096_v32 }
 0x270   : > { %v1098_v37 = vpop.f32.mrf.mxu1 }
 0x271   : > { %v787_v38 = vpack.c.bf16 %v786_v36, %v786_v36 }
 0x273   : > { %1174 = vmatmul.mubr.bf16.vlgmr.msra.gmra.mxu1 %v787_v38 }
 0x333   : > { %v887_v40 = vpop.f32.mrf.mxu1 }
 0x334   : > { %v888_v41 = vadd.f32 %v887_v40, %v804_v39 }
 0x335   : > { %v1175_v42 = vpop.f32.mrf.mxu1 }
 0x336   : > { %893 = vst [vmem:[%s310_s9] sm:$0x1] %v888_v41 }
 0x337   : > { %v890_v43 = vpop.f32.mrf.mxu1 }
 0x338   : > { %1410 = shalt.err (!%p1407_p6)
}
 0x339   : > { %s1411_s27 = scalar_lea.hbm %s1775_s10, 16  ;;  %s1415_s20 = scalar_lea.hbm %s1824_s6, 32 }
 0x33a   : > { %p1412_p4 = scmp.ne.s32.totalorder %s1775_s10, %s1411_s27  ;;  %p1416_p8 = scmp.lt.s32.totalorder %s1775_s10, %s1824_s6 }
 0x33b   : > { %p1417_p9 = scmp.lt.s32.totalorder %s1415_s20, %s1411_s27 }
 0x33c   : > { %p1413_p1 = pnand %p1412_p4, %p1846_p5 }
 0x33d   : > { %p1418_p3 = por %p1417_p9, %p1416_p8 }
 0x33e   : > { %p1414_p11 = pneg %p1413_p1 }
 0x340   : > { %p1419_p12 = pnand %p1418_p3, %p1414_p11 }
 0x342   : > { %1422 = shalt.err (!%p1419_p12)
}
 0x343   : > { %1191 = dma.vmem_to_hbm [thread:$0]  (%p1846_p5), %s1777_s26, 16, %s1775_s10, %s895_s16   ;;  %v1176_v44 = vpop.f32.mrf.mxu1 }
 0x344 PF: > { %s919_s9 = sand.u32 1, %s1457_s21   ;;  %p1847_p7 = scmp.ne.s32.totalorder %s1832_s28, 0 }
 0x345   : > { %p1848_p10 = scmp.ge.s32.totalorder %s1469_s24, 2  ;;  %s920_s14 = scalar_lea.sflag [#allocation4], %s919_s9 }
 0x347   : > { %p1208_p13 = pnand %p1848_p10, %p1847_p7 }
 0x349   : > { %p1209_p0 = pneg %p1208_p13 }
 0x34b   : > { %1452 = dma.done.wait (%p1209_p0), %s920_s14, 16  }
 0x34c   : > { %1454 = vsyncadd (%p1209_p0), %s920_s14, 4294967280  ;;  %p21_p2 = scmp.ge.s32.totalorder %s1602_s8, 4   ;;  %s1849_s21 = smov %s1461_s22 }
 0x34d   : > { %s1850_s22 = smov %s1465_s23  ;;  %s1851_s23 = smov %s1612_s11 }
 0x34e   : > { %s1852_s24 = smov %s1602_s8  ;;  %23 = sbr.rel (!%p21_p2) target bundleno = 7 (0x7), region = 101 }
 0x353   :  { %924 = vsyncpa [#allocation3], 1 }
 0x354   :  { %926 = vsyncpa [#allocation3 + $0x1], 1 }
 0x355   :  { %927 = vsyncpa [#allocation6], 1 }
 0x356   :  { %928 = vsyncpa [#allocation9], 1 }
 0x357   :  { %929 = vsyncpa [#allocation4], 1 }
 0x358   :  { %931 = vsyncpa [#allocation4 + $0x1], 1 }

</bundles_post_ra>
